<compile_context>
chip_gen: v7x
topology: tpu7x:2x2x1
jax: 0.10.0
libtpu: 0.0.40
codegen_flags: <defaults>
</compile_context>

<pallas_src>
import functools

import jax
import jax.numpy as jnp
from jax import lax
from jax.experimental import pallas as pl
from jax.experimental.pallas import tpu as pltpu

EPS = 1e-5
LANE = 128
# Rows (= bt * Lt) of the flattened (B*L, P) matrix handled per grid step.
# ~10.6 MiB double-buffered at (P + E) = 162 f32 columns: fits v5e's scoped
# VMEM and v7x's 64 MiB physical VMEM with headroom, while keeping per-step
# DMA in the multi-MB range so fixed per-step overhead is amortized.
MAX_ROWS_PER_STEP = 8192
VMEM_LIMIT_BYTES = 32 * 1024 * 1024  # >= v5e default (16 MiB), <= v7x physical (64 MiB)


def _choose_tiles(B: int, L: int):
    """Pick (bt, lt): batch-block size and L-tile size for one grid step."""
    if L <= MAX_ROWS_PER_STEP:
        lt = L  # full-extent block: contiguous DMA, no partial-tile masking
        # Fold several batches into one step when L is small (amortize the
        # fixed per-step cost), but keep >= 2 batch blocks when B >= 2 so
        # pass 1 can still be sharded across v7x's two TensorCores.
        bt_cap = min(8, max(1, MAX_ROWS_PER_STEP // max(L, 1)), B)
        bt = 1
        for cand in range(bt_cap, 0, -1):
            if B % cand == 0 and (B // cand >= 2 or B == 1):
                bt = cand
                break
    else:
        lt = (MAX_ROWS_PER_STEP // LANE) * LANE  # 8192, a lane multiple
        bt = 1
    return bt, lt


def _project(x_pl, w):
    """(P, Lt) x-slab  contracted with  (P, E) weights  ->  (Lt, E) f32."""
    return lax.dot_general(x_pl, w, (((0,), (0,)), ((), ())),
                           preferred_element_type=jnp.float32)


def _stats_kernel(x_ref, w_ref, ssum_ref, ssq_ref, *, bt, l_total, l_tile,
                  needs_mask):
    t = pl.program_id(1)

    @pl.when(t == 0)
    def _():
        ssum_ref[...] = jnp.zeros_like(ssum_ref)
        ssq_ref[...] = jnp.zeros_like(ssq_ref)

    w = w_ref[...]
    e = ssum_ref.shape[-1]
    acc_s = jnp.zeros((1, e), jnp.float32)
    acc_q = jnp.zeros((1, e), jnp.float32)
    for i in range(bt):  # bt is small (<= 8) and static
        y = _project(x_ref[i], w)  # (Lt, E)
        if needs_mask:
            # Exclude padded columns of a partial last L-tile from the stats.
            # Keep the select form: multiply-by-mask would propagate padded
            # garbage (NaN/Inf) into the sums.
            col = lax.broadcasted_iota(jnp.int32, (l_tile, 1), 0) + t * l_tile
            y = jnp.where(col < l_total, y, 0.0)
        acc_s = acc_s + jnp.sum(y, axis=0, keepdims=True)
        acc_q = acc_q + jnp.sum(y * y, axis=0, keepdims=True)
    ssum_ref[0] += acc_s
    ssq_ref[0] += acc_q


def _apply_kernel(x_ref, w_ref, scale_ref, shift_ref, o_ref, *, bt):
    w = w_ref[...]
    scale = scale_ref[...]  # (1, E)
    shift = shift_ref[...]  # (1, E)
    for i in range(bt):
        y = _project(x_ref[i], w)  # (Lt, E)
        o_ref[i] = (y * scale + shift).astype(o_ref.dtype)


def embedding_forward(x, w, b, gamma, beta):
    """x: (B, P, L) f32; w: (P, E); b/gamma/beta: (E,).  Returns (B, L, E).

    Matches the PyTorch module's forward with BatchNorm1d in training mode.
    The Linear bias `b` cancels exactly under the BN mean subtraction, so it
    is accepted for API parity but not used.
    """
    del b  # cancelled by training-mode BatchNorm (mean subtraction)
    B, P, L = x.shape
    E = w.shape[1]
    N = B * L

    bt, lt = _choose_tiles(B, L)
    n_bb = B // bt
    n_lt = pl.cdiv(L, lt)
    grid = (n_bb, n_lt)
    needs_mask = (L % lt) != 0

    x_spec = pl.BlockSpec((bt, P, lt), lambda bb, t: (bb, 0, t))
    w_spec = pl.BlockSpec((P, E), lambda bb, t: (0, 0))        # resident params
    part_spec = pl.BlockSpec((1, 1, E), lambda bb, t: (bb, 0, 0))
    vec_spec = pl.BlockSpec((1, E), lambda bb, t: (0, 0))

    matmul_flops = 2 * N * P * E
    in_bytes = 4 * (B * P * L + P * E)

    # ---- Pass 1: per-batch-block sum / sum-of-squares of z = x @ w ----
    ssum, ssq = pl.pallas_call(
        functools.partial(_stats_kernel, bt=bt, l_total=L, l_tile=lt,
                          needs_mask=needs_mask),
        out_shape=(jax.ShapeDtypeStruct((n_bb, 1, E), jnp.float32),
                   jax.ShapeDtypeStruct((n_bb, 1, E), jnp.float32)),
        grid=grid,
        in_specs=[x_spec, w_spec],
        out_specs=(part_spec, part_spec),
        compiler_params=pltpu.CompilerParams(
            dimension_semantics=("parallel", "arbitrary"),
            vmem_limit_bytes=VMEM_LIMIT_BYTES),
        cost_estimate=pl.CostEstimate(
            flops=matmul_flops + 3 * N * E, transcendentals=0,
            bytes_accessed=in_bytes + 4 * 2 * n_bb * E),
    )(x, w)

    # Tiny glue in plain JAX: reduce partials, fold BN into one scale/shift.
    ssum = jnp.sum(ssum, axis=0)   # (1, E)
    ssq = jnp.sum(ssq, axis=0)     # (1, E)
    mean = ssum / N
    # TODO(synk): one-pass variance (E[z^2]-E[z]^2) can lose precision when
    # |mean| >> std at very large N; switch to per-tile (count, mean, M2)
    # merging if that regime ever matters.
    var = jnp.maximum(ssq / N - mean * mean, 0.0)
    scale = gamma.reshape(1, E) * lax.rsqrt(var + EPS)
    shift = beta.reshape(1, E) - mean * scale

    # ---- Pass 2: recompute the cheap K=34 matmul, apply one FMA/element ----
    out = pl.pallas_call(
        functools.partial(_apply_kernel, bt=bt),
        out_shape=jax.ShapeDtypeStruct((B, L, E), x.dtype),
        grid=grid,
        in_specs=[x_spec, w_spec, vec_spec, vec_spec],
        out_specs=pl.BlockSpec((bt, lt, E), lambda bb, t: (bb, t, 0)),
        compiler_params=pltpu.CompilerParams(
            dimension_semantics=("parallel", "parallel"),
            vmem_limit_bytes=VMEM_LIMIT_BYTES),
        cost_estimate=pl.CostEstimate(
            flops=matmul_flops + 2 * N * E, transcendentals=0,
            bytes_accessed=in_bytes + 4 * (2 * E + B * L * E)),
    )(x, w, scale, shift)

    return out


def embedding_reference(x, w, b, gamma, beta):
    """Pure-JAX reference mirroring the PyTorch forward (training-mode BN)."""
    B, P, L = x.shape
    E = w.shape[1]
    x2 = jnp.transpose(x, (0, 2, 1)).reshape(B * L, P)
    y = x2 @ w + b
    mean = jnp.mean(y, axis=0, keepdims=True)
    var = jnp.mean((y - mean) ** 2, axis=0, keepdims=True)
    y = (y - mean) / jnp.sqrt(var + EPS) * gamma + beta
    return y.reshape(B, L, E)


if __name__ == "__main__":
    # Module-consistent shapes: n_features=34, embed_dim=128.
    # L=320 now maps to a single full-extent L block (no partial-tile mask);
    # B=2 keeps two batch blocks so the "parallel" batch axis is exercised.
    B, P, L, E = 2, 34, 320, 128

    key = jax.random.PRNGKey(0)
    kx, kw, kb, kg, kbe = jax.random.split(key, 5)

    x = jax.random.normal(kx, (B, P, L), dtype=jnp.float32)
    # nn.Linear weight is (E, P); we store it transposed as (P, E).
    w = jax.random.normal(kw, (P, E), dtype=jnp.float32) * 0.1
    b = jax.random.normal(kb, (E,), dtype=jnp.float32) * 0.1
    gamma = 1.0 + 0.05 * jax.random.normal(kg, (E,), dtype=jnp.float32)
    beta = 0.05 * jax.random.normal(kbe, (E,), dtype=jnp.float32)

    fwd = jax.jit(embedding_forward)
    out = jax.block_until_ready(fwd(x, w, b, gamma, beta))

    ref = embedding_reference(x, w, b, gamma, beta)
    assert out.shape == (B, L, E), out.shape
    max_err = float(jnp.max(jnp.abs(out - ref)))
    assert jnp.allclose(out, ref, atol=1e-4, rtol=1e-4), f"mismatch, max_err={max_err}"

    print("KERNEL_OK")
</pallas_src>

<mosaic_0001>
module attributes {stable_mosaic.version = 11 : i64} {
  func.func @_stats_kernel(%arg0: i32, %arg1: i32, %arg2: memref<1x34x320xf32, #tpu.memory_space<vmem>>, %arg3: memref<34x128xf32, #tpu.memory_space<vmem>>, %arg4: memref<1x1x128xf32, #tpu.memory_space<vmem>>, %arg5: memref<1x1x128xf32, #tpu.memory_space<vmem>>) attributes {dimension_semantics = [#tpu.dimension_semantics<parallel>, #tpu.dimension_semantics<arbitrary>], iteration_bounds = array<i64: 2, 1>, scalar_prefetch = 0 : i64, scratch_operands = 0 : i64, tpu.core_type = #tpu.core_type<tc>, window_params = [{transform_indices = @transform_0, window_bounds = array<i64: 1, 34, 320>}, {pipeline_mode = #tpu.pipeline_mode<synchronous>, transform_indices = @transform_1, window_bounds = array<i64: 34, 128>}, {transform_indices = @transform_2, window_bounds = array<i64: 1, 1, 128>}, {transform_indices = @transform_3, window_bounds = array<i64: 1, 1, 128>}]} {
    %c0_i32 = arith.constant 0 : i32
    %0 = arith.cmpi eq, %arg1, %c0_i32 : i32
    %1 = arith.extui %0 : i1 to i32
    %c0_i32_0 = arith.constant 0 : i32
    %2 = arith.cmpi ne, %1, %c0_i32_0 : i32
    scf.if %2 {
      %cst_21 = arith.constant 0.000000e+00 : f32
      %28 = vector.broadcast %cst_21 : f32 to vector<1x1x128xf32>
      %c0_22 = arith.constant 0 : index
      %c0_23 = arith.constant 0 : index
      %c0_24 = arith.constant 0 : index
      %29 = vector.load %arg4[%c0_22, %c0_23, %c0_24] : memref<1x1x128xf32, #tpu.memory_space<vmem>>, vector<1x1x128xf32>
      tpu.vector_store %arg4[%c0_22, %c0_23, %c0_24], %28 {strides = array<i32>} : memref<1x1x128xf32, #tpu.memory_space<vmem>>, vector<1x1x128xf32>,
      %cst_25 = arith.constant 0.000000e+00 : f32
      %30 = vector.broadcast %cst_25 : f32 to vector<1x1x128xf32>
      %c0_26 = arith.constant 0 : index
      %c0_27 = arith.constant 0 : index
      %c0_28 = arith.constant 0 : index
      %31 = vector.load %arg5[%c0_26, %c0_27, %c0_28] : memref<1x1x128xf32, #tpu.memory_space<vmem>>, vector<1x1x128xf32>
      tpu.vector_store %arg5[%c0_26, %c0_27, %c0_28], %30 {strides = array<i32>} : memref<1x1x128xf32, #tpu.memory_space<vmem>>, vector<1x1x128xf32>,
    } else {
    }
    %c0 = arith.constant 0 : index
    %c0_1 = arith.constant 0 : index
    %3 = vector.load %arg3[%c0, %c0_1] : memref<34x128xf32, #tpu.memory_space<vmem>>, vector<34x128xf32>
    %cst = arith.constant 0.000000e+00 : f32
    %4 = vector.broadcast %cst : f32 to vector<1x128xf32>
    %cst_2 = arith.constant 0.000000e+00 : f32
    %5 = vector.broadcast %cst_2 : f32 to vector<1x128xf32>
    %c0_3 = arith.constant 0 : index
    %c0_4 = arith.constant 0 : index
    %c0_5 = arith.constant 0 : index
    %6 = vector.load %arg2[%c0_3, %c0_4, %c0_5] : memref<1x34x320xf32, #tpu.memory_space<vmem>>, vector<1x34x320xf32>
    %7 = vector.shape_cast %6 : vector<1x34x320xf32> to vector<34x320xf32>
    %cst_6 = arith.constant dense<0.000000e+00> : vector<320x128xf32>
    %8 = tpu.matmul %7, %3, %cst_6 {dimension_numbers = #tpu.dot_dimension_numbers<[0], [0], [1], [1], [0, 1, 1, 1], [], []>} : vector<34x320xf32>, vector<34x128xf32>, vector<320x128xf32> -> vector<320x128xf32>
    %cst_7 = arith.constant dense<0.000000e+00> : vector<128xf32>
    %9 = vector.multi_reduction <add>, %8, %cst_7 [0] : vector<320x128xf32> to vector<128xf32>
    %10 = vector.shape_cast %9 : vector<128xf32> to vector<1x128xf32>
    %11 = arith.addf %4, %10 : vector<1x128xf32>
    %12 = arith.mulf %8, %8 : vector<320x128xf32>
    %cst_8 = arith.constant dense<0.000000e+00> : vector<128xf32>
    %13 = vector.multi_reduction <add>, %12, %cst_8 [0] : vector<320x128xf32> to vector<128xf32>
    %14 = vector.shape_cast %13 : vector<128xf32> to vector<1x128xf32>
    %15 = arith.addf %5, %14 : vector<1x128xf32>
    %c0_9 = arith.constant 0 : index
    %c0_10 = arith.constant 0 : index
    %c0_11 = arith.constant 0 : index
    %16 = vector.load %arg4[%c0_9, %c0_10, %c0_11] : memref<1x1x128xf32, #tpu.memory_space<vmem>>, vector<1x1x128xf32>
    %17 = vector.shape_cast %16 : vector<1x1x128xf32> to vector<1x128xf32>
    %18 = arith.addf %17, %11 : vector<1x128xf32>
    %c0_12 = arith.constant 0 : index
    %c0_13 = arith.constant 0 : index
    %c0_14 = arith.constant 0 : index
    %19 = vector.load %arg4[%c0_12, %c0_13, %c0_14] : memref<1x1x128xf32, #tpu.memory_space<vmem>>, vector<1x1x128xf32>
    %20 = vector.shape_cast %19 : vector<1x1x128xf32> to vector<1x128xf32>
    %21 = vector.shape_cast %18 : vector<1x128xf32> to vector<1x1x128xf32>
    tpu.vector_store %arg4[%c0_12, %c0_13, %c0_14], %21 {strides = array<i32>} : memref<1x1x128xf32, #tpu.memory_space<vmem>>, vector<1x1x128xf32>,
    %c0_15 = arith.constant 0 : index
    %c0_16 = arith.constant 0 : index
    %c0_17 = arith.constant 0 : index
    %22 = vector.load %arg5[%c0_15, %c0_16, %c0_17] : memref<1x1x128xf32, #tpu.memory_space<vmem>>, vector<1x1x128xf32>
    %23 = vector.shape_cast %22 : vector<1x1x128xf32> to vector<1x128xf32>
    %24 = arith.addf %23, %15 : vector<1x128xf32>
    %c0_18 = arith.constant 0 : index
    %c0_19 = arith.constant 0 : index
    %c0_20 = arith.constant 0 : index
    %25 = vector.load %arg5[%c0_18, %c0_19, %c0_20] : memref<1x1x128xf32, #tpu.memory_space<vmem>>, vector<1x1x128xf32>
    %26 = vector.shape_cast %25 : vector<1x1x128xf32> to vector<1x128xf32>
    %27 = vector.shape_cast %24 : vector<1x128xf32> to vector<1x1x128xf32>
    tpu.vector_store %arg5[%c0_18, %c0_19, %c0_20], %27 {strides = array<i32>} : memref<1x1x128xf32, #tpu.memory_space<vmem>>, vector<1x1x128xf32>,
    return
  }
  func.func @transform_0(%arg0: i32, %arg1: i32) -> (i32, i32, i32) {
    %c0_i32 = arith.constant 0 : i32
    %c0_i32_0 = arith.constant 0 : i32
    return %arg0, %c0_i32, %arg1 : i32, i32, i32
  }
  func.func @transform_1(%arg0: i32, %arg1: i32) -> (i32, i32) {
    %c0_i32 = arith.constant 0 : i32
    %c0_i32_0 = arith.constant 0 : i32
    %c0_i32_1 = arith.constant 0 : i32
    return %c0_i32, %c0_i32_0 : i32, i32
  }
  func.func @transform_2(%arg0: i32, %arg1: i32) -> (i32, i32, i32) {
    %c0_i32 = arith.constant 0 : i32
    %c0_i32_0 = arith.constant 0 : i32
    %c0_i32_1 = arith.constant 0 : i32
    return %arg0, %c0_i32, %c0_i32_0 : i32, i32, i32
  }
  func.func @transform_3(%arg0: i32, %arg1: i32) -> (i32, i32, i32) {
    %c0_i32 = arith.constant 0 : i32
    %c0_i32_0 = arith.constant 0 : i32
    %c0_i32_1 = arith.constant 0 : i32
    return %arg0, %c0_i32, %c0_i32_0 : i32, i32, i32
  }
}

module attributes {stable_mosaic.version = 11 : i64} {
  func.func @_apply_kernel(%arg0: i32, %arg1: i32, %arg2: memref<1x34x320xf32, #tpu.memory_space<vmem>>, %arg3: memref<34x128xf32, #tpu.memory_space<vmem>>, %arg4: memref<1x128xf32, #tpu.memory_space<vmem>>, %arg5: memref<1x128xf32, #tpu.memory_space<vmem>>, %arg6: memref<1x320x128xf32, #tpu.memory_space<vmem>>) attributes {dimension_semantics = [#tpu.dimension_semantics<parallel>, #tpu.dimension_semantics<parallel>], iteration_bounds = array<i64: 2, 1>, scalar_prefetch = 0 : i64, scratch_operands = 0 : i64, tpu.core_type = #tpu.core_type<tc>, window_params = [{transform_indices = @transform_0, window_bounds = array<i64: 1, 34, 320>}, {pipeline_mode = #tpu.pipeline_mode<synchronous>, transform_indices = @transform_1, window_bounds = array<i64: 34, 128>}, {pipeline_mode = #tpu.pipeline_mode<synchronous>, transform_indices = @transform_2, window_bounds = array<i64: 1, 128>}, {pipeline_mode = #tpu.pipeline_mode<synchronous>, transform_indices = @transform_3, window_bounds = array<i64: 1, 128>}, {transform_indices = @transform_4, window_bounds = array<i64: 1, 320, 128>}]} {
    %c0 = arith.constant 0 : index
    %c0_0 = arith.constant 0 : index
    %0 = vector.load %arg3[%c0, %c0_0] : memref<34x128xf32, #tpu.memory_space<vmem>>, vector<34x128xf32>
    %c0_1 = arith.constant 0 : index
    %c0_2 = arith.constant 0 : index
    %1 = vector.load %arg4[%c0_1, %c0_2] : memref<1x128xf32, #tpu.memory_space<vmem>>, vector<1x128xf32>
    %c0_3 = arith.constant 0 : index
    %c0_4 = arith.constant 0 : index
    %2 = vector.load %arg5[%c0_3, %c0_4] : memref<1x128xf32, #tpu.memory_space<vmem>>, vector<1x128xf32>
    %c0_5 = arith.constant 0 : index
    %c0_6 = arith.constant 0 : index
    %c0_7 = arith.constant 0 : index
    %3 = vector.load %arg2[%c0_5, %c0_6, %c0_7] : memref<1x34x320xf32, #tpu.memory_space<vmem>>, vector<1x34x320xf32>
    %4 = vector.shape_cast %3 : vector<1x34x320xf32> to vector<34x320xf32>
    %cst = arith.constant dense<0.000000e+00> : vector<320x128xf32>
    %5 = tpu.matmul %4, %0, %cst {dimension_numbers = #tpu.dot_dimension_numbers<[0], [0], [1], [1], [0, 1, 1, 1], [], []>} : vector<34x320xf32>, vector<34x128xf32>, vector<320x128xf32> -> vector<320x128xf32>
    %6 = vector.broadcast %1 : vector<1x128xf32> to vector<320x128xf32>
    %7 = arith.mulf %5, %6 : vector<320x128xf32>
    %8 = vector.broadcast %2 : vector<1x128xf32> to vector<320x128xf32>
    %9 = arith.addf %7, %8 : vector<320x128xf32>
    %c0_8 = arith.constant 0 : index
    %c0_9 = arith.constant 0 : index
    %c0_10 = arith.constant 0 : index
    %10 = vector.load %arg6[%c0_8, %c0_9, %c0_10] : memref<1x320x128xf32, #tpu.memory_space<vmem>>, vector<1x320x128xf32>
    %11 = vector.shape_cast %10 : vector<1x320x128xf32> to vector<320x128xf32>
    %12 = vector.shape_cast %9 : vector<320x128xf32> to vector<1x320x128xf32>
    tpu.vector_store %arg6[%c0_8, %c0_9, %c0_10], %12 {strides = array<i32>} : memref<1x320x128xf32, #tpu.memory_space<vmem>>, vector<1x320x128xf32>,
    return
  }
  func.func @transform_0(%arg0: i32, %arg1: i32) -> (i32, i32, i32) {
    %c0_i32 = arith.constant 0 : i32
    %c0_i32_0 = arith.constant 0 : i32
    return %arg0, %c0_i32, %arg1 : i32, i32, i32
  }
  func.func @transform_1(%arg0: i32, %arg1: i32) -> (i32, i32) {
    %c0_i32 = arith.constant 0 : i32
    %c0_i32_0 = arith.constant 0 : i32
    %c0_i32_1 = arith.constant 0 : i32
    return %c0_i32, %c0_i32_0 : i32, i32
  }
  func.func @transform_2(%arg0: i32, %arg1: i32) -> (i32, i32) {
    %c0_i32 = arith.constant 0 : i32
    %c0_i32_0 = arith.constant 0 : i32
    %c0_i32_1 = arith.constant 0 : i32
    return %c0_i32, %c0_i32_0 : i32, i32
  }
  func.func @transform_3(%arg0: i32, %arg1: i32) -> (i32, i32) {
    %c0_i32 = arith.constant 0 : i32
    %c0_i32_0 = arith.constant 0 : i32
    %c0_i32_1 = arith.constant 0 : i32
    return %c0_i32, %c0_i32_0 : i32, i32
  }
  func.func @transform_4(%arg0: i32, %arg1: i32) -> (i32, i32, i32) {
    %c0_i32 = arith.constant 0 : i32
    %c0_i32_0 = arith.constant 0 : i32
    return %arg0, %arg1, %c0_i32 : i32, i32, i32
  }
}

</mosaic_0001>

<bundles_post_ra>
// kernel: embedding_forward.2
= control target key start
LH: loop header
LB: loop body
LE: loop exit
PB: predicated region body
PF: predicated region fallthrough
CT: control target
= control target key end

     0   :  { %s1189_s12 = smov 0   ;;  %s1191_s13 = smov 0   ;;  %s1362_s0 = inlined_call_operand.vmem [shape: f32[2,34,320], index: 0, kind: input, shape index: {}]   ;;  %s1363_s1 = inlined_call_operand.vmem [shape: f32[34,128], index: 1, kind: input, shape index: {}]   ;;  %s1364_s2 = inlined_call_operand.vmem [shape: f32[2,1,128], index: 2, kind: output, shape index: {0}]   ;;  %s1365_s3 = inlined_call_operand.vmem [shape: f32[2,1,128], index: 3, kind: output, shape index: {1}]  }
   0x1   :  { %s1193_s14 = smov 0  }
   0x2 LB: > { %s26_s15 = sadd.s32 1, %s1162_s13  ;;  %p944_p0 = scmp.ge.s32.totalorder %s1166_s14, 1  ;;  %s1166_s14 = sphi %s1193_s14, %s14_s14   ;;  %s1162_s13 = sphi %s1191_s13, %s1367_s13   ;;  %s1158_s12 = sphi %s1189_s12, %s1366_s12  }
   0x3   : > { %p28_p1 = scmp.ge.s32.totalorder %s26_s15, 2  ;;  %p159_p2 = scmp.lt.s32.totalorder %s1166_s14, 3 }
   0x5   : > { %s1369_s15 = smov (%p28_p1, %s26_s15), 0  ;;  %p160_p3 = pnand %p944_p0, %p159_p2 }
   0x6   : > { %p189_p4 = scmp.lt.s32.totalorder (!%p160_p3), %s1158_s12, 1  ;;  %v210_v0 = vld [vmem:[%s1363_s1] sm:$0xff] (!%p160_p3)  ;;  %v211_v1 = vld [vmem:[%s1363_s1 + $0x8] sm:$0xff] (!%p160_p3)  ;;  %v212_v2 = vld [vmem:[%s1363_s1 + $0x10] sm:$0xff] (!%p160_p3)  ;;  %vm447_vm0 = vcmask (!%p160_p3), 1041408   ;;  %vm326_vm1 = vcmask (!%p160_p3), 277504  }
   0x7   : > { %163 = sbr.rel (%p160_p3) target bundleno = 490 (0x1ea), region = 28  ;;  %v1104_v3 = vpack.c.bf16 (!%p160_p3), %v211_v1, %v210_v0  ;;  %v213_v4 = vld [vmem:[%s1363_s1 + $0x18] sm:$0xff] (!%p160_p3)  ;;  %v214_v10 = vld [vmem:[%s1363_s1 + $0x20] sm:$0x3] (!%p160_p3)  ;;  %v1168_v62 = vmov (!%p160_p3), 0.0  }
   0x8   : > { %v1108_v5 = vpack.c.bf16 (!%p160_p3), %v213_v4, %v212_v2 }
   0x9   : > { %1105 = vmatprep.subr.bf16.mxu0 (!%p160_p3), %v1104_v3  ;;  %1112 = vmatprep.subr.bf16.mxu1 (!%p160_p3), %v1104_v3 }
   0xa   : > { %1107 = vmatpush3.bf16.msra.mxu0 (!%p160_p3), %v1104_v3  ;;  %1115 = vmatpush3.bf16.msra.mxu1 (!%p160_p3), %v1104_v3 }
   0xb   : > { %1109 = vmatprep.subr.bf16.mxu0 (!%p160_p3), %v1108_v5  ;;  %1113 = vmatprep.subr.bf16.mxu1 (!%p160_p3), %v1108_v5 }
   0xe   : > { %s1371_s12 = smov (!%p189_p4, %s1158_s12), 1  ;;  %1111 = vmatpush3.bf16.msra.mxu0 %v1108_v5  ;;  %1116 = vmatpush3.bf16.msra.mxu1 %v1108_v5 }
   0xf   : > { %s1118_s24 = smul.u32 120, %s1371_s12  ;;  %1042 = vmatprep.subr.msk.mxu0 %vm447_vm0, %v214_v10  ;;  %1114 = vmatprep.subr.msk.mxu1 %vm447_vm0, %v214_v10  ;;  %s1289_s5 = scalar_lea.vmem %s1364_s2, %s1371_s12 }
  0x10   : > { %s1295_s8 = scalar_lea.vmem %s1365_s3, %s1371_s12  ;;  %208 = vst [vmem:[%s1289_s5] sm:$0x1] %v1168_v62 }
  0x11   : > { %s1225_s27 = scalar_lea.vmem %s1362_s0, %s1118_s24  ;;  %209 = vst [vmem:[%s1295_s8] sm:$0x1] %v1168_v62 }
  0x12   : > { %v215_v6 = vld [vmem:[%s1225_s27] sm:$0xff]  ;;  %v216_v7 = vld [vmem:[%s1225_s27 + $0x8] sm:$0xff]  ;;  %v218_v8 = vld [vmem:[%s1225_s27 + $0x18] sm:$0xff]  ;;  %1043 = vmatpush3.msk.msra.mxu0 %vm447_vm0, %v214_v10  ;;  %1117 = vmatpush3.msk.msra.mxu1 %vm447_vm0, %v214_v10 }
  0x13   : > { %230 = vxpose.xlu0.b32.start [1/5] (short) %v215_v6, 128  ;;  %262 = vxpose.xlu1.b32.start [1/5] (short) %v216_v7, 128  ;;  %v219_v9 = vld [vmem:[%s1225_s27 + $0x20] sm:$0xff]  ;;  %v221_v11 = vld [vmem:[%s1225_s27 + $0x30] sm:$0xff]  ;;  %v222_v12 = vld [vmem:[%s1225_s27 + $0x38] sm:$0xff] }
  0x14   : > { %v224_v13 = vld [vmem:[%s1225_s27 + $0x48] sm:$0xff]  ;;  %v225_v14 = vld [vmem:[%s1225_s27 + $0x50] sm:$0xff]  ;;  %v227_v15 = vld [vmem:[%s1225_s27 + $0x60] sm:$0x3] }
  0x15   : > { %v228_v16 = vld [vmem:[%s1225_s27 + $0x68] sm:$0x3]  ;;  %v217_v17 = vld [vmem:[%s1225_s27 + $0x10] sm:$0xff]  ;;  %v223_v19 = vld [vmem:[%s1225_s27 + $0x40] sm:$0xff] }
  0x16   : > { %v220_v18 = vld [vmem:[%s1225_s27 + $0x28] sm:$0xff]  ;;  %v226_v20 = vld [vmem:[%s1225_s27 + $0x58] sm:$0xff]  ;;  %v229_v21 = vld [vmem:[%s1225_s27 + $0x70] sm:$0x3] }
  0x17   : > { %231 = vxpose.xlu0.b32.cont [2/5] (short) %v218_v8, 128  ;;  %263 = vxpose.xlu1.b32.cont [2/5] (short) %v219_v9, 128 }
  0x1b   : > { %232 = vxpose.xlu0.b32.cont [3/5] (short) %v221_v11, 128  ;;  %264 = vxpose.xlu1.b32.cont [3/5] (short) %v222_v12, 128 }
  0x1f   : > { %233 = vxpose.xlu0.b32.cont [4/5] (short) %v224_v13, 128  ;;  %265 = vxpose.xlu1.b32.cont [4/5] (short) %v225_v14, 128 }
  0x23   : > { %234 = vxpose.xlu0.b32.end [5/5] (short) %v227_v15, 128  ;;  %266 = vxpose.xlu1.b32.end [5/5] (short) %v228_v16, 128 }
  0x50   : > { %294 = vxpose.xlu0.b32.start [1/5] (short) (narrow) %v217_v17, 64 }
  0x54   : > { %295 = vxpose.xlu0.b32.cont [2/5] (short) (narrow) %v220_v18, 64 }
  0x58   : > { %296 = vxpose.xlu0.b32.cont [3/5] (short) (narrow) %v223_v19, 64 }
  0x5c   : > { %297 = vxpose.xlu0.b32.cont [4/5] (short) (narrow) %v226_v20, 64 }
  0x60   : > { %298 = vxpose.xlu0.b32.end [5/5] (short) (narrow) %v229_v21, 64 }
  0x93   : > { %v246_v22 = vpop.trf.xlu0  ;;  %v278_v23 = vpop.trf.xlu1 }
  0x94   : > { %1044 = vmatprep.mubr.msk.f32.mxu0 %vm326_vm1, %v246_v22 }
  0x97   : > { %v247_v24 = vpop.trf.xlu0  ;;  %v279_v25 = vpop.trf.xlu1 }
  0x98   : > { %1045 = vmatmul.mubr.msk.f32.vlgmr.msra.gmra.mrb[0].mxu0 %vm326_vm1, %v247_v24 }
  0x9b   : > { %v248_v26 = vpop.trf.xlu0  ;;  %v280_v27 = vpop.trf.xlu1 }
  0x9c   : > { %1047 = vmatprep.mubr.msk.f32.mxu0 %vm326_vm1, %v248_v26 }
  0x9f   : > { %v249_v28 = vpop.trf.xlu0  ;;  %v281_v29 = vpop.trf.xlu1 }
  0xa0   : > { %1048 = vmatmul.mubr.msk.f32.gmra.mrb[2].mxu0 %vm326_vm1, %v249_v28 }
  0xa3   : > { %v250_v30 = vpop.trf.xlu0  ;;  %v282_v31 = vpop.trf.xlu1 }
  0xa4   : > { %1050 = vmatprep.mubr.msk.f32.mxu0 %vm326_vm1, %v250_v30  ;;  %1074 = vmatprep.mubr.msk.f32.mxu1 %vm326_vm1, %v282_v31 }
  0xa7   : > { %v251_v32 = vpop.trf.xlu0  ;;  %v283_v33 = vpop.trf.xlu1 }
  0xa8   : > { %1051 = vmatmul.mubr.msk.f32.gmra.mrb[4].mxu0 %vm326_vm1, %v251_v32  ;;  %1075 = vmatmul.mubr.msk.f32.vlgmr.msra.gmra.mrb[0].mxu1 %vm326_vm1, %v283_v33 }
  0xab   : > { %v252_v34 = vpop.trf.xlu0  ;;  %v284_v35 = vpop.trf.xlu1 }
  0xac   : > { %1053 = vmatprep.mubr.msk.f32.mxu0 %vm326_vm1, %v252_v34  ;;  %1077 = vmatprep.mubr.msk.f32.mxu1 %vm326_vm1, %v284_v35 }
  0xaf   : > { %v253_v36 = vpop.trf.xlu0  ;;  %v285_v37 = vpop.trf.xlu1 }
  0xb0   : > { %1054 = vmatmul.mubr.msk.f32.gmra.mrb[6].mxu0 %vm326_vm1, %v253_v36  ;;  %1078 = vmatmul.mubr.msk.f32.gmra.mrb[2].mxu1 %vm326_vm1, %v285_v37 }
  0xb3   : > { %v254_v38 = vpop.trf.xlu0  ;;  %v286_v39 = vpop.trf.xlu1 }
  0xb4   : > { %1056 = vmatprep.mubr.msk.f32.mxu0 %vm326_vm1, %v254_v38  ;;  %1080 = vmatprep.mubr.msk.f32.mxu1 %vm326_vm1, %v286_v39 }
  0xb7   : > { %v255_v40 = vpop.trf.xlu0  ;;  %v287_v41 = vpop.trf.xlu1 }
  0xb8   : > { %1057 = vmatmul.mubr.msk.f32.gmra.mrb[8].mxu0 %vm326_vm1, %v255_v40  ;;  %1081 = vmatmul.mubr.msk.f32.gmra.mrb[4].mxu1 %vm326_vm1, %v287_v41 }
  0xbb   : > { %v256_v42 = vpop.trf.xlu0  ;;  %v288_v43 = vpop.trf.xlu1 }
  0xbc   : > { %1059 = vmatprep.mubr.msk.f32.mxu0 %vm326_vm1, %v256_v42  ;;  %1083 = vmatprep.mubr.msk.f32.mxu1 %vm326_vm1, %v288_v43 }
  0xbf   : > { %v257_v44 = vpop.trf.xlu0  ;;  %v289_v45 = vpop.trf.xlu1 }
  0xc0   : > { %1060 = vmatmul.mubr.msk.f32.gmra.mrb[10].mxu0 %vm326_vm1, %v257_v44  ;;  %1084 = vmatmul.mubr.msk.f32.gmra.mrb[6].mxu1 %vm326_vm1, %v289_v45 }
  0xc3   : > { %v258_v46 = vpop.trf.xlu0  ;;  %v290_v47 = vpop.trf.xlu1 }
  0xc4   : > { %1062 = vmatprep.mubr.msk.f32.mxu0 %vm326_vm1, %v258_v46  ;;  %1086 = vmatprep.mubr.msk.f32.mxu1 %vm326_vm1, %v290_v47 }
  0xc7   : > { %v259_v48 = vpop.trf.xlu0  ;;  %v291_v49 = vpop.trf.xlu1 }
  0xc8   : > { %1063 = vmatmul.mubr.msk.f32.gmra.mrb[12].mxu0 %vm326_vm1, %v259_v48  ;;  %1087 = vmatmul.mubr.msk.f32.gmra.mrb[8].mxu1 %vm326_vm1, %v291_v49 }
  0xcb   : > { %v260_v50 = vpop.trf.xlu0  ;;  %v292_v51 = vpop.trf.xlu1 }
  0xcc   : > { %1065 = vmatprep.mubr.msk.f32.mxu0 %vm326_vm1, %v260_v50  ;;  %1089 = vmatprep.mubr.msk.f32.mxu1 %vm326_vm1, %v292_v51 }
  0xcf   : > { %v261_v52 = vpop.trf.xlu0  ;;  %v293_v53 = vpop.trf.xlu1 }
  0xd0   : > { %1066 = vmatmul.mubr.msk.f32.gmra.mrb[14].mxu0 %vm326_vm1, %v261_v52  ;;  %1090 = vmatmul.mubr.msk.f32.gmra.mrb[10].mxu1 %vm326_vm1, %v293_v53 }
  0xd1   : > { %1068 = vmatprep.mubr.msk.f32.mxu0 %vm326_vm1, %v278_v23 }
  0xd3   : > { %v310_v54 = vpop.trf.xlu0 }
  0xd4   : > { %1069 = vmatmul.mubr.msk.f32.gmra.mrb[16].mxu0 %vm326_vm1, %v279_v25  ;;  %1092 = vmatprep.mubr.msk.f32.mxu1 %vm326_vm1, %v310_v54 }
  0xd5   : > { %1071 = vmatprep.mubr.msk.f32.mxu0 %vm326_vm1, %v280_v27 }
  0xd7   : > { %v311_v55 = vpop.trf.xlu0 }
  0xd8   : > { %1072 = vmatmul.mubr.msk.f32.gmra.mrb[18].mxu0 %vm326_vm1, %v281_v29  ;;  %1093 = vmatmul.mubr.msk.f32.gmra.mrb[12].mxu1 %vm326_vm1, %v311_v55 }
  0xdb   : > { %v312_v56 = vpop.trf.xlu0 }
  0xdc   : > { %1095 = vmatprep.mubr.msk.f32.mxu1 %vm326_vm1, %v312_v56 }
  0xdf   : > { %v313_v57 = vpop.trf.xlu0 }
  0xe0   : > { %1096 = vmatmul.mubr.msk.f32.gmra.mrb[14].mxu1 %vm326_vm1, %v313_v57 }
  0xe3   : > { %v314_v58 = vpop.trf.xlu0 }
  0xe4   : > { %1098 = vmatprep.mubr.msk.f32.mxu1 %vm326_vm1, %v314_v58 }
  0xe7   : > { %v315_v59 = vpop.trf.xlu0 }
  0xe8   : > { %1099 = vmatmul.mubr.msk.f32.gmra.mrb[16].mxu1 %vm326_vm1, %v315_v59 }
  0xeb   : > { %v316_v60 = vpop.trf.xlu0 }
  0xec   : > { %1101 = vmatprep.mubr.msk.f32.mxu1 %vm326_vm1, %v316_v60 }
  0xef   : > { %v317_v61 = vpop.trf.xlu0 }
  0xf0   : > { %1102 = vmatmul.mubr.msk.f32.gmra.mrb[18].mxu1 %vm326_vm1, %v317_v61 }
 0x16b   : > { %v1046_v63 = vpop.f32.mrb[0].mxu0 }
 0x16c   : > { %v763_v0 = vmul.f32 %v1046_v63, %v1046_v63  ;;  %v517_v1 = vpop.f32.mrb[1].mxu0 }
 0x16d   : > { %v716_v2 = vadd.f32 %v1046_v63, %v517_v1  ;;  %v762_v3 = vmul.f32 %v517_v1, %v517_v1 }
 0x16f   : > { %v802_v4 = vadd.f32 %v763_v0, %v762_v3 }
 0x173   : > { %v1049_v5 = vpop.f32.mrb[2].mxu0 }
 0x174   : > { %v527_v6 = vpop.f32.mrb[3].mxu0  ;;  %v765_v9 = vmul.f32 %v1049_v5, %v1049_v5 }
 0x175   : > { %v717_v7 = vadd.f32 %v716_v2, %v527_v6  ;;  %v764_v8 = vmul.f32 %v527_v6, %v527_v6 }
 0x177   : > { %v803_v10 = vadd.f32 %v802_v4, %v764_v8  ;;  %v718_v11 = vadd.f32 %v1049_v5, %v717_v7 }
 0x179   : > { %v804_v12 = vadd.f32 %v803_v10, %v765_v9 }
 0x17b   : > { %v1052_v13 = vpop.f32.mrb[4].mxu0  ;;  %v1299_v15 = vpop.f32.mrb[0].mxu1 }
 0x17c   : > { %v537_v14 = vpop.f32.mrb[5].mxu0  ;;  %v1301_v18 = vpop.f32.mrb[1].mxu1  ;;  %v767_v19 = vmul.f32 %v1052_v13, %v1052_v13 }
 0x17d   : > { %v719_v16 = vadd.f32 %v718_v11, %v537_v14  ;;  %v766_v17 = vmul.f32 %v537_v14, %v537_v14 }
 0x17f   : > { %v805_v20 = vadd.f32 %v804_v12, %v766_v17  ;;  %v720_v21 = vadd.f32 %v1052_v13, %v719_v16 }
 0x181   : > { %v806_v22 = vadd.f32 %v805_v20, %v767_v19 }
 0x183   : > { %v1055_v23 = vpop.f32.mrb[6].mxu0  ;;  %v1303_v25 = vpop.f32.mrb[2].mxu1 }
 0x184   : > { %v547_v24 = vpop.f32.mrb[7].mxu0  ;;  %v1305_v28 = vpop.f32.mrb[3].mxu1  ;;  %v769_v29 = vmul.f32 %v1055_v23, %v1055_v23 }
 0x185   : > { %v721_v26 = vadd.f32 %v720_v21, %v547_v24  ;;  %v768_v27 = vmul.f32 %v547_v24, %v547_v24 }
 0x187   : > { %v807_v30 = vadd.f32 %v806_v22, %v768_v27  ;;  %v722_v31 = vadd.f32 %v1055_v23, %v721_v26 }
 0x189   : > { %v808_v32 = vadd.f32 %v807_v30, %v769_v29  ;;  %v782_v30 = vmul.f32 %v1301_v18, %v1301_v18 }
 0x18b   : > { %v1058_v33 = vpop.f32.mrb[8].mxu0  ;;  %v1307_v35 = vpop.f32.mrb[4].mxu1 }
 0x18c   : > { %v557_v34 = vpop.f32.mrb[9].mxu0  ;;  %v1309_v38 = vpop.f32.mrb[5].mxu1  ;;  %v771_v39 = vmul.f32 %v1058_v33, %v1058_v33 }
 0x18d   : > { %v723_v36 = vadd.f32 %v722_v31, %v557_v34  ;;  %v770_v37 = vmul.f32 %v557_v34, %v557_v34 }
 0x18f   : > { %v809_v40 = vadd.f32 %v808_v32, %v770_v37  ;;  %v724_v41 = vadd.f32 %v1058_v33, %v723_v36  ;;  %v783_v33 = vmul.f32 %v1299_v15, %v1299_v15 }
 0x191   : > { %v810_v42 = vadd.f32 %v809_v40, %v771_v39  ;;  %v784_v40 = vmul.f32 %v1305_v28, %v1305_v28 }
 0x193   : > { %v1061_v43 = vpop.f32.mrb[10].mxu0  ;;  %v1311_v45 = vpop.f32.mrb[6].mxu1 }
 0x194   : > { %v567_v44 = vpop.f32.mrb[11].mxu0  ;;  %v1313_v48 = vpop.f32.mrb[7].mxu1  ;;  %v773_v49 = vmul.f32 %v1061_v43, %v1061_v43 }
 0x195   : > { %v725_v46 = vadd.f32 %v724_v41, %v567_v44  ;;  %v772_v47 = vmul.f32 %v567_v44, %v567_v44 }
 0x197   : > { %v811_v50 = vadd.f32 %v810_v42, %v772_v47  ;;  %v726_v51 = vadd.f32 %v1061_v43, %v725_v46  ;;  %v785_v43 = vmul.f32 %v1303_v25, %v1303_v25  ;;  %v786_v46 = vmul.f32 %v1309_v38, %v1309_v38 }
 0x199   : > { %v812_v52 = vadd.f32 %v811_v50, %v773_v49  ;;  %v787_v49 = vmul.f32 %v1307_v35, %v1307_v35 }
 0x19b   : > { %v1064_v53 = vpop.f32.mrb[12].mxu0  ;;  %v1315_v55 = vpop.f32.mrb[8].mxu1 }
 0x19c   : > { %v577_v54 = vpop.f32.mrb[13].mxu0  ;;  %v657_v58 = vpop.f32.mrb[9].mxu1  ;;  %v775_v59 = vmul.f32 %v1064_v53, %v1064_v53 }
 0x19d   : > { %v727_v56 = vadd.f32 %v726_v51, %v577_v54  ;;  %v774_v57 = vmul.f32 %v577_v54, %v577_v54  ;;  %v788_v54 = vmul.f32 %v1313_v48, %v1313_v48 }
 0x19f   : > { %v813_v60 = vadd.f32 %v812_v52, %v774_v57  ;;  %v728_v61 = vadd.f32 %v1064_v53, %v727_v56  ;;  %v789_v56 = vmul.f32 %v1311_v45, %v1311_v45 }
 0x1a1   : > { %v814_v62 = vadd.f32 %v813_v60, %v775_v59  ;;  %v790_v60 = vmul.f32 %v657_v58, %v657_v58 }
 0x1a3   : > { %v1067_v63 = vpop.f32.mrb[14].mxu0  ;;  %v1317_v1 = vpop.f32.mrb[10].mxu1 }
 0x1a4   : > { %v587_v0 = vpop.f32.mrb[15].mxu0  ;;  %v667_v4 = vpop.f32.mrb[11].mxu1  ;;  %v777_v5 = vmul.f32 %v1067_v63, %v1067_v63 }
 0x1a5   : > { %v729_v2 = vadd.f32 %v728_v61, %v587_v0  ;;  %v776_v3 = vmul.f32 %v587_v0, %v587_v0  ;;  %v792_v0 = vmul.f32 %v667_v4, %v667_v4 }
 0x1a7   : > { %v815_v6 = vadd.f32 %v814_v62, %v776_v3  ;;  %v1070_v7 = vpop.f32.mrb[16].mxu0  ;;  %v730_v8 = vadd.f32 %v1067_v63, %v729_v2 }
 0x1a8   : > { %v597_v9 = vpop.f32.mrb[17].mxu0  ;;  %v779_v13 = vmul.f32 %v1070_v7, %v1070_v7 }
 0x1a9   : > { %v731_v10 = vadd.f32 %v730_v8, %v597_v9  ;;  %v778_v11 = vmul.f32 %v597_v9, %v597_v9  ;;  %v816_v12 = vadd.f32 %v815_v6, %v777_v5  ;;  %v793_v6 = vmul.f32 %v1317_v1, %v1317_v1 }
 0x1ab   : > { %v817_v14 = vadd.f32 %v816_v12, %v778_v11  ;;  %v1073_v16 = vpop.f32.mrb[18].mxu0  ;;  %v732_v17 = vadd.f32 %v1070_v7, %v731_v10  ;;  %v1094_v19 = vpop.f32.mrb[12].mxu1 }
 0x1ac   : > { %v607_v20 = vpop.f32.mrb[19].mxu0  ;;  %v677_v21 = vpop.f32.mrb[13].mxu1  ;;  %v781_v26 = vmul.f32 %v1073_v16, %v1073_v16  ;;  %v795_v10 = vmul.f32 %v1094_v19, %v1094_v19 }
 0x1ad   : > { %v733_v22 = vadd.f32 %v732_v17, %v607_v20  ;;  %v780_v23 = vmul.f32 %v607_v20, %v607_v20  ;;  %v818_v24 = vadd.f32 %v817_v14, %v779_v13 }
 0x1af   : > { %v734_v27 = vadd.f32 %v1073_v16, %v733_v22  ;;  %v819_v29 = vadd.f32 %v818_v24, %v780_v23 }
 0x1b1   : > { %v735_v31 = vadd.f32 %v734_v27, %v1301_v18  ;;  %v820_v32 = vadd.f32 %v819_v29, %v781_v26 }
 0x1b3   : > { %v736_v34 = vadd.f32 %v1299_v15, %v735_v31  ;;  %v821_v36 = vadd.f32 %v820_v32, %v782_v30  ;;  %v1097_v37 = vpop.f32.mrb[14].mxu1 }
 0x1b4   : > { %v687_v39 = vpop.f32.mrb[15].mxu1  ;;  %v797_v16 = vmul.f32 %v1097_v37, %v1097_v37 }
 0x1b5   : > { %v737_v41 = vadd.f32 %v736_v34, %v1305_v28  ;;  %v822_v42 = vadd.f32 %v821_v36, %v783_v33  ;;  %v796_v14 = vmul.f32 %v687_v39, %v687_v39 }
 0x1b7   : > { %v823_v44 = vadd.f32 %v822_v42, %v784_v40  ;;  %v738_v18 = vadd.f32 %v1303_v25, %v737_v41 }
 0x1b9   : > { %v739_v15 = vadd.f32 %v738_v18, %v1309_v38  ;;  %v824_v47 = vadd.f32 %v823_v44, %v785_v43  ;;  %v848_v44 = vld [vmem:[%s1289_s5] sm:$0x1] }
 0x1bb   : > { %v740_v50 = vadd.f32 %v1307_v35, %v739_v15  ;;  %v825_v51 = vadd.f32 %v824_v47, %v786_v46  ;;  %v1100_v28 = vpop.f32.mrb[16].mxu1  ;;  %v791_v35 = vmul.f32 %v1315_v55, %v1315_v55  ;;  %v851_v15 = vld [vmem:[%s1295_s8] sm:$0x1] }
 0x1bc   : > { %v697_v52 = vpop.f32.mrb[17].mxu1  ;;  %v799_v24 = vmul.f32 %v1100_v28, %v1100_v28 }
 0x1bd   : > { %v741_v53 = vadd.f32 %v740_v50, %v1313_v48  ;;  %v826_v25 = vadd.f32 %v825_v51, %v787_v49  ;;  %v798_v22 = vmul.f32 %v697_v52, %v697_v52 }
 0x1bf   : > { %v827_v57 = vadd.f32 %v826_v25, %v788_v54  ;;  %v742_v38 = vadd.f32 %v1311_v45, %v741_v53 }
 0x1c1   : > { %v743_v59 = vadd.f32 %v742_v38, %v657_v58  ;;  %v828_v61 = vadd.f32 %v827_v57, %v789_v56  ;;  %v794_v58 = vmul.f32 %v677_v21, %v677_v21 }
 0x1c3   : > { %v829_v62 = vadd.f32 %v828_v61, %v790_v60  ;;  %v744_v63 = vadd.f32 %v1315_v55, %v743_v59  ;;  %v1103_v2 = vpop.f32.mrb[18].mxu1 }
 0x1c4   : > { %v707_v3 = vpop.f32.mrb[19].mxu1  ;;  %v801_v30 = vmul.f32 %v1103_v2, %v1103_v2 }
 0x1c5   : > { %v745_v48 = vadd.f32 %v744_v63, %v667_v4  ;;  %v830_v5 = vadd.f32 %v829_v62, %v791_v35  ;;  %v800_v29 = vmul.f32 %v707_v3, %v707_v3 }
 0x1c7   : > { %v831_v7 = vadd.f32 %v830_v5, %v792_v0  ;;  %v746_v45 = vadd.f32 %v1317_v1, %v745_v48 }
 0x1c9   : > { %v747_v8 = vadd.f32 %v746_v45, %v677_v21  ;;  %v832_v9 = vadd.f32 %v831_v7, %v793_v6 }
 0x1cb   : > { %v833_v11 = vadd.f32 %v832_v9, %v794_v58  ;;  %v748_v12 = vadd.f32 %v1094_v19, %v747_v8 }
 0x1cd   : > { %v749_v13 = vadd.f32 %v748_v12, %v687_v39  ;;  %v834_v55 = vadd.f32 %v833_v11, %v795_v10 }
 0x1cf   : > { %v835_v17 = vadd.f32 %v834_v55, %v796_v14  ;;  %v750_v20 = vadd.f32 %v1097_v37, %v749_v13 }
 0x1d1   : > { %v751_v4 = vadd.f32 %v750_v20, %v697_v52  ;;  %v836_v23 = vadd.f32 %v835_v17, %v797_v16 }
 0x1d3   : > { %v837_v26 = vadd.f32 %v836_v23, %v798_v22  ;;  %v752_v27 = vadd.f32 %v1100_v28, %v751_v4 }
 0x1d5   : > { %v753_v1 = vadd.f32 %v752_v27, %v707_v3  ;;  %v838_v21 = vadd.f32 %v837_v26, %v799_v24 }
 0x1d7   : > { %v754_v31 = vadd.f32 %v1103_v2, %v753_v1  ;;  %v839_v19 = vadd.f32 %v838_v21, %v800_v29 }
 0x1d9   : > { %v755_v32 = vrot.slane %v754_v31, 4  ;;  %v840_v33 = vadd.f32 %v839_v19, %v801_v30 }
 0x1db   : > { %v756_v34 = vadd.f32 %v755_v32, %v754_v31  ;;  %v841_v36 = vrot.slane %v840_v33, 4 }
 0x1dd   : > { %v757_v37 = vrot.slane %v756_v34, 2  ;;  %v842_v39 = vadd.f32 %v841_v36, %v840_v33 }
 0x1df   : > { %v758_v40 = vadd.f32 %v757_v37, %v756_v34  ;;  %v843_v41 = vrot.slane %v842_v39, 2 }
 0x1e1   : > { %v759_v42 = vrot.slane %v758_v40, 1  ;;  %v844_v43 = vadd.f32 %v843_v41, %v842_v39 }
 0x1e3   : > { %v760_v18 = vadd.f32 %v759_v42, %v758_v40  ;;  %v845_v46 = vrot.slane %v844_v43, 1 }
 0x1e5   : > { %v846_v47 = vadd.f32 %v845_v46, %v844_v43  ;;  %v849_v49 = vadd.f32 %v848_v44, %v760_v18 }
 0x1e7   : > { %850 = vst [vmem:[%s1289_s5] sm:$0x1] %v849_v49  ;;  %v852_v50 = vadd.f32 %v851_v15, %v846_v47 }
 0x1e9   : > { %853 = vst [vmem:[%s1295_s8] sm:$0x1] %v852_v50 }
 0x1ea PF: > { %s14_s14 = sadd.s32 1, %s1166_s14   ;;  %s1366_s12 = smov %s1162_s13 }
 0x1eb   : > { %p11_p5 = scmp.ge.s32.totalorder %s14_s14, 4   ;;  %s1367_s13 = smov %s1369_s15 }
 0x1ed   :  { %13 = sbr.rel (!%p11_p5) target bundleno = 2 (0x2), region = 74 }

// kernel: embedding_forward.3
= control target key start
LH: loop header
LB: loop body
LE: loop exit
PB: predicated region body
PF: predicated region fallthrough
CT: control target
= control target key end

     0   :  { %9 = vsyncpa [#allocation3], 0  ;;  %s1636_s0 = inlined_call_operand.vmem [shape: f32[2,34,320], index: 0, kind: input, shape index: {}]   ;;  %s1637_s1 = inlined_call_operand.vmem [shape: f32[34,128], index: 1, kind: input, shape index: {}]   ;;  %s1638_s2 = inlined_call_operand.vmem [shape: f32[1,128], index: 2, kind: input, shape index: {}]   ;;  %s1639_s3 = inlined_call_operand.vmem [shape: f32[1,128], index: 3, kind: input, shape index: {}]   ;;  %s1640_s4 = inlined_call_operand.hbm [shape: f32[2,320,128], index: 4, kind: output, shape index: {}]  }
   0x1   :  { %11 = vsyncpa [#allocation3 + $0x1], 0  ;;  %s1312_s15 = smov 0   ;;  %s1314_s16 = smov 0  }
   0x2   :  { %s1316_s17 = smov 0   ;;  %s1318_s18 = smov 0  }
   0x3   :  { %s1320_s19 = smov 0   ;;  %s1322_s20 = smov 0  }
   0x4 LB: > { %s962_s21 = sadd.s32 4294967295, %s1282_s20   ;;  %s963_s22 = sadd.s32 4294967294, %s1282_s20   ;;  %s1282_s20 = sphi %s1322_s20, %s17_s20   ;;  %s1278_s19 = sphi %s1320_s19, %s1647_s19   ;;  %s1274_s18 = sphi %s1318_s18, %s1646_s18   ;;  %s1270_s17 = sphi %s1316_s17, %s1645_s17   ;;  %s1266_s16 = sphi %s1314_s16, %s1644_s16   ;;  %s1262_s15 = sphi %s1312_s15, %s1643_s15  }
   0x5   : > { %s29_s23 = sadd.s32 1, %s1278_s19  ;;  %s129_s24 = sadd.s32 1, %s1270_s17 }
   0x6   : > { %p31_p0 = scmp.ge.s32.totalorder %s29_s23, 2  ;;  %p139_p1 = scmp.ne.s32.totalorder %s1270_s17, %s1266_s16 }
   0x7   : > { %p140_p2 = scmp.eq.s32.totalorder %s962_s21, 1  ;;  %p145_p3 = scmp.ne.s32.totalorder %s1266_s16, %s1262_s15 }
   0x8   : > { %s1649_s23 = smov (%p31_p0, %s29_s23), 0  ;;  %p146_p5 = scmp.eq.s32.totalorder %s963_s22, 1 }
   0x9   : > { %p1352_p4 = por %p140_p2, %p139_p1  ;;  %s124_s26 = ssub.s32 %s1278_s19, %s1649_s23 }
   0xa   : > { %p966_p6 = scmp.ge.s32.totalorder %s1282_s20, 1  ;;  %p127_p7 = scmp.eq.s32.totalorder %s124_s26, 0 }
   0xb   : > { %p1359_p8 = por %p146_p5, %p145_p3  ;;  %p186_p9 = scmp.lt.s32.totalorder %s1282_s20, 3 }
   0xc   : > { %s1365_s28 = scalar_select %p127_p7, %s1270_s17, %s129_s24  }
   0xd   : > { %p187_p10 = pnand %p966_p6, %p186_p9 }
   0xe   : > { %p217_p11 = scmp.lt.s32.totalorder (!%p187_p10), %s1274_s18, 1  ;;  %v227_v6 = vld [vmem:[%s1637_s1] sm:$0xff] (!%p187_p10)  ;;  %v228_v7 = vld [vmem:[%s1637_s1 + $0x8] sm:$0xff] (!%p187_p10)  ;;  %v229_v11 = vld [vmem:[%s1637_s1 + $0x10] sm:$0xff] (!%p187_p10)  ;;  %vm466_vm0 = vcmask (!%p187_p10), 1041408   ;;  %vm345_vm1 = vcmask (!%p187_p10), 277504  }
   0xf   : > { %190 = sbr.rel (%p187_p10) target bundleno = 481 (0x1e1), region = 36  ;;  %v1129_v10 = vpack.c.bf16 (!%p187_p10), %v228_v7, %v227_v6  ;;  %v230_v12 = vld [vmem:[%s1637_s1 + $0x18] sm:$0xff] (!%p187_p10)  ;;  %v231_v16 = vld [vmem:[%s1637_s1 + $0x20] sm:$0x3] (!%p187_p10)  ;;  %s213_s26 = sand.u32 (!%p187_p10), 1, %s1266_s16  }
  0x10   : > { %v1133_v15 = vpack.c.bf16 (!%p187_p10), %v230_v12, %v229_v11  ;;  %v1450_v62 = vld [vmem:[%s1638_s2] ss:$0 sm:$0xff] (!%p187_p10)  ;;  %s1145_s9 = smul.u32 (!%p187_p10), 5120, %s1274_s18  ;;  %s1284_s21 = smov (!%p187_p10), [#allocation2]  }
  0x11   : > { %1137 = vmatprep.subr.bf16.mxu1 (!%p187_p10), %v1129_v10  ;;  %1130 = vmatprep.subr.bf16.mxu0 (!%p187_p10), %v1129_v10  ;;  %s1208_s22 = sshll.u32 (!%p187_p10), %s1284_s21, 4  ;;  %s1209_s22 = int_to_ptr.vmem [resolvable:$false] %s1208_s22 }
  0x12   : > { %1140 = vmatpush3.bf16.msra.mxu1 (!%p187_p10), %v1129_v10  ;;  %1132 = vmatpush3.bf16.msra.mxu0 (!%p187_p10), %v1129_v10  ;;  %s1581_s13 = scalar_lea.hbm (!%p187_p10), %s1640_s4, %s1145_s9  ;;  %s1210_s24 = scalar_lea.vmem (!%p187_p10), %s1209_s22, 10240 }
  0x13   : > { %1138 = vmatprep.subr.bf16.mxu1 (!%p187_p10), %v1133_v15  ;;  %1134 = vmatprep.subr.bf16.mxu0 (!%p187_p10), %v1133_v15 }
  0x16   : > { %s218_s29 = scalar_select %p217_p11, %s1274_s18, 1  ;;  %1141 = vmatpush3.bf16.msra.mxu1 %v1133_v15  ;;  %1136 = vmatpush3.bf16.msra.mxu0 %v1133_v15 }
  0x17   : > { %1139 = vmatprep.subr.msk.mxu1 %vm466_vm0, %v231_v16  ;;  %1067 = vmatprep.subr.msk.mxu0 %vm466_vm0, %v231_v16  ;;  %s1590_s18 = scalar_lea.sflag [#allocation3], %s213_s26 }
  0x18   : > { %s1144_s30 = smul.u32 120, %s218_s29 }
  0x19   : > { %s1143_s29 = smul.u32 320, %s213_s26 }
  0x1a   : > { %s1372_s7 = scalar_lea.vmem %s1636_s0, %s1144_s30  ;;  %1142 = vmatpush3.msk.msra.mxu1 %vm466_vm0, %v231_v16  ;;  %1068 = vmatpush3.msk.msra.mxu0 %vm466_vm0, %v231_v16 }
  0x1b   : > { %v235_v0 = vld [vmem:[%s1372_s7 + $0x8] sm:$0xff]  ;;  %v234_v1 = vld [vmem:[%s1372_s7] sm:$0xff]  ;;  %v237_v3 = vld [vmem:[%s1372_s7 + $0x18] sm:$0xff]  ;;  %s1461_s8 = scalar_lea.vmem [#allocation2], %s1143_s29 }
  0x1c   : > { %281 = vxpose.xlu0.b32.start [1/5] (short) %v235_v0, 128  ;;  %249 = vxpose.xlu1.b32.start [1/5] (short) %v234_v1, 128  ;;  %v238_v2 = vld [vmem:[%s1372_s7 + $0x20] sm:$0xff]  ;;  %v241_v4 = vld [vmem:[%s1372_s7 + $0x38] sm:$0xff]  ;;  %v240_v5 = vld [vmem:[%s1372_s7 + $0x30] sm:$0xff]  ;;  %s883_s10 = sshll.u32 %s1461_s8, 4  ;;  %s1583_s10 = int_to_ptr.vmem [resolvable:$true] %s883_s10 }
  0x1d   : > { %v244_v8 = vld [vmem:[%s1372_s7 + $0x50] sm:$0xff]  ;;  %v243_v9 = vld [vmem:[%s1372_s7 + $0x48] sm:$0xff]  ;;  %v246_v14 = vld [vmem:[%s1372_s7 + $0x60] sm:$0x3]  ;;  %s1204_s14 = scalar_lea.vmem %s1583_s10, 5120  ;;  %p1211_p1 = scmp.lt.s32.totalorder %s1583_s10, %s1209_s22 }
  0x1e   : > { %v247_v13 = vld [vmem:[%s1372_s7 + $0x68] sm:$0x3]  ;;  %v236_v17 = vld [vmem:[%s1372_s7 + $0x10] sm:$0xff]  ;;  %v242_v19 = vld [vmem:[%s1372_s7 + $0x40] sm:$0xff]  ;;  %p1205_p12 = scmp.ne.s32.totalorder %s1583_s10, %s1204_s14  ;;  %p1212_p2 = scmp.lt.s32.totalorder %s1210_s24, %s1204_s14 }
  0x1f   : > { %v239_v18 = vld [vmem:[%s1372_s7 + $0x28] sm:$0xff]  ;;  %v245_v20 = vld [vmem:[%s1372_s7 + $0x58] sm:$0xff]  ;;  %v248_v21 = vld [vmem:[%s1372_s7 + $0x70] sm:$0x3] }
  0x20   : > { %282 = vxpose.xlu0.b32.cont [2/5] (short) %v238_v2, 128  ;;  %250 = vxpose.xlu1.b32.cont [2/5] (short) %v237_v3, 128  ;;  %v1456_v2 = vld [vmem:[%s1639_s3] ss:$0 sm:$0xff]  ;;  %p1206_p13 = pnand %p1205_p12, %p1352_p4  ;;  %p1213_p3 = por %p1212_p2, %p1211_p1 }
  0x22   : > { %p1207_p0 = pneg %p1206_p13 }
  0x24   : > { %283 = vxpose.xlu0.b32.cont [3/5] (short) %v241_v4, 128  ;;  %251 = vxpose.xlu1.b32.cont [3/5] (short) %v240_v5, 128  ;;  %p1214_p5 = pnand %p1213_p3, %p1207_p0 }
  0x28   : > { %284 = vxpose.xlu0.b32.cont [4/5] (short) %v244_v8, 128  ;;  %252 = vxpose.xlu1.b32.cont [4/5] (short) %v243_v9, 128 }
  0x2c   : > { %285 = vxpose.xlu0.b32.end [5/5] (short) %v247_v13, 128  ;;  %253 = vxpose.xlu1.b32.end [5/5] (short) %v246_v14, 128 }
  0x59   : > { %313 = vxpose.xlu0.b32.start [1/5] (short) (narrow) %v236_v17, 64 }
  0x5d   : > { %314 = vxpose.xlu0.b32.cont [2/5] (short) (narrow) %v239_v18, 64 }
  0x61   : > { %315 = vxpose.xlu0.b32.cont [3/5] (short) (narrow) %v242_v19, 64 }
  0x65   : > { %316 = vxpose.xlu0.b32.cont [4/5] (short) (narrow) %v245_v20, 64 }
  0x69   : > { %317 = vxpose.xlu0.b32.end [5/5] (short) (narrow) %v248_v21, 64 }
  0x9c   : > { %v297_v22 = vpop.trf.xlu0  ;;  %v265_v23 = vpop.trf.xlu1 }
  0x9d   : > { %1069 = vmatprep.mubr.msk.f32.mxu0 %vm345_vm1, %v265_v23 }
  0xa0   : > { %v298_v24 = vpop.trf.xlu0  ;;  %v266_v25 = vpop.trf.xlu1 }
  0xa1   : > { %1070 = vmatmul.mubr.msk.f32.vlgmr.msra.gmra.mrb[0].mxu0 %vm345_vm1, %v266_v25 }
  0xa4   : > { %v299_v26 = vpop.trf.xlu0  ;;  %v267_v27 = vpop.trf.xlu1 }
  0xa5   : > { %1072 = vmatprep.mubr.msk.f32.mxu0 %vm345_vm1, %v267_v27 }
  0xa8   : > { %v300_v28 = vpop.trf.xlu0  ;;  %v268_v29 = vpop.trf.xlu1 }
  0xa9   : > { %1073 = vmatmul.mubr.msk.f32.gmra.mrb[2].mxu0 %vm345_vm1, %v268_v29 }
  0xac   : > { %v301_v30 = vpop.trf.xlu0  ;;  %v269_v31 = vpop.trf.xlu1 }
  0xad   : > { %1099 = vmatprep.mubr.msk.f32.mxu1 %vm345_vm1, %v301_v30  ;;  %1075 = vmatprep.mubr.msk.f32.mxu0 %vm345_vm1, %v269_v31 }
  0xb0   : > { %v302_v32 = vpop.trf.xlu0  ;;  %v270_v33 = vpop.trf.xlu1 }
  0xb1   : > { %1100 = vmatmul.mubr.msk.f32.vlgmr.msra.gmra.mrb[0].mxu1 %vm345_vm1, %v302_v32  ;;  %1076 = vmatmul.mubr.msk.f32.gmra.mrb[4].mxu0 %vm345_vm1, %v270_v33 }
  0xb4   : > { %v303_v34 = vpop.trf.xlu0  ;;  %v271_v35 = vpop.trf.xlu1 }
  0xb5   : > { %1102 = vmatprep.mubr.msk.f32.mxu1 %vm345_vm1, %v303_v34  ;;  %1078 = vmatprep.mubr.msk.f32.mxu0 %vm345_vm1, %v271_v35 }
  0xb8   : > { %v304_v36 = vpop.trf.xlu0  ;;  %v272_v37 = vpop.trf.xlu1 }
  0xb9   : > { %1103 = vmatmul.mubr.msk.f32.gmra.mrb[2].mxu1 %vm345_vm1, %v304_v36  ;;  %1079 = vmatmul.mubr.msk.f32.gmra.mrb[6].mxu0 %vm345_vm1, %v272_v37 }
  0xbc   : > { %v305_v38 = vpop.trf.xlu0  ;;  %v273_v39 = vpop.trf.xlu1 }
  0xbd   : > { %1105 = vmatprep.mubr.msk.f32.mxu1 %vm345_vm1, %v305_v38  ;;  %1081 = vmatprep.mubr.msk.f32.mxu0 %vm345_vm1, %v273_v39 }
  0xc0   : > { %v306_v40 = vpop.trf.xlu0  ;;  %v274_v41 = vpop.trf.xlu1 }
  0xc1   : > { %1106 = vmatmul.mubr.msk.f32.gmra.mrb[4].mxu1 %vm345_vm1, %v306_v40  ;;  %1082 = vmatmul.mubr.msk.f32.gmra.mrb[8].mxu0 %vm345_vm1, %v274_v41 }
  0xc4   : > { %v307_v42 = vpop.trf.xlu0  ;;  %v275_v43 = vpop.trf.xlu1 }
  0xc5   : > { %1108 = vmatprep.mubr.msk.f32.mxu1 %vm345_vm1, %v307_v42  ;;  %1084 = vmatprep.mubr.msk.f32.mxu0 %vm345_vm1, %v275_v43 }
  0xc8   : > { %v308_v44 = vpop.trf.xlu0  ;;  %v276_v45 = vpop.trf.xlu1 }
  0xc9   : > { %1109 = vmatmul.mubr.msk.f32.gmra.mrb[6].mxu1 %vm345_vm1, %v308_v44  ;;  %1085 = vmatmul.mubr.msk.f32.gmra.mrb[10].mxu0 %vm345_vm1, %v276_v45 }
  0xcc   : > { %v309_v46 = vpop.trf.xlu0  ;;  %v277_v47 = vpop.trf.xlu1 }
  0xcd   : > { %1111 = vmatprep.mubr.msk.f32.mxu1 %vm345_vm1, %v309_v46  ;;  %1087 = vmatprep.mubr.msk.f32.mxu0 %vm345_vm1, %v277_v47 }
  0xd0   : > { %v310_v48 = vpop.trf.xlu0  ;;  %v278_v49 = vpop.trf.xlu1 }
  0xd1   : > { %1112 = vmatmul.mubr.msk.f32.gmra.mrb[8].mxu1 %vm345_vm1, %v310_v48  ;;  %1088 = vmatmul.mubr.msk.f32.gmra.mrb[12].mxu0 %vm345_vm1, %v278_v49 }
  0xd4   : > { %v311_v50 = vpop.trf.xlu0  ;;  %v279_v51 = vpop.trf.xlu1 }
  0xd5   : > { %1114 = vmatprep.mubr.msk.f32.mxu1 %vm345_vm1, %v311_v50  ;;  %1090 = vmatprep.mubr.msk.f32.mxu0 %vm345_vm1, %v279_v51 }
  0xd8   : > { %v312_v52 = vpop.trf.xlu0  ;;  %v280_v53 = vpop.trf.xlu1 }
  0xd9   : > { %1091 = vmatmul.mubr.msk.f32.gmra.mrb[14].mxu0 %vm345_vm1, %v280_v53  ;;  %1115 = vmatmul.mubr.msk.f32.gmra.mrb[10].mxu1 %vm345_vm1, %v312_v52 }
  0xda   : > { %1093 = vmatprep.mubr.msk.f32.mxu0 %vm345_vm1, %v297_v22 }
  0xdc   : > { %v329_v54 = vpop.trf.xlu0 }
  0xdd   : > { %1094 = vmatmul.mubr.msk.f32.gmra.mrb[16].mxu0 %vm345_vm1, %v298_v24  ;;  %1117 = vmatprep.mubr.msk.f32.mxu1 %vm345_vm1, %v329_v54 }
  0xde   : > { %1096 = vmatprep.mubr.msk.f32.mxu0 %vm345_vm1, %v299_v26 }
  0xe0   : > { %v330_v55 = vpop.trf.xlu0 }
  0xe1   : > { %1097 = vmatmul.mubr.msk.f32.gmra.mrb[18].mxu0 %vm345_vm1, %v300_v28  ;;  %1118 = vmatmul.mubr.msk.f32.gmra.mrb[12].mxu1 %vm345_vm1, %v330_v55 }
  0xe4   : > { %v331_v56 = vpop.trf.xlu0 }
  0xe5   : > { %1120 = vmatprep.mubr.msk.f32.mxu1 %vm345_vm1, %v331_v56 }
  0xe8   : > { %v332_v57 = vpop.trf.xlu0 }
  0xe9   : > { %1121 = vmatmul.mubr.msk.f32.gmra.mrb[14].mxu1 %vm345_vm1, %v332_v57 }
  0xec   : > { %v333_v58 = vpop.trf.xlu0 }
  0xed   : > { %1123 = vmatprep.mubr.msk.f32.mxu1 %vm345_vm1, %v333_v58 }
  0xf0   : > { %v334_v59 = vpop.trf.xlu0 }
  0xf1   : > { %1124 = vmatmul.mubr.msk.f32.gmra.mrb[16].mxu1 %vm345_vm1, %v334_v59 }
  0xf4   : > { %v335_v60 = vpop.trf.xlu0 }
  0xf5   : > { %1126 = vmatprep.mubr.msk.f32.mxu1 %vm345_vm1, %v335_v60 }
  0xf8   : > { %v336_v61 = vpop.trf.xlu0 }
  0xf9   : > { %1127 = vmatmul.mubr.msk.f32.gmra.mrb[18].mxu1 %vm345_vm1, %v336_v61 }
 0x174   : > { %v1071_v63 = vpop.f32.mrb[0].mxu0 }
 0x175   : > { %v742_v0 = vmul.f32 %v1071_v63, %v1450_v62  ;;  %v536_v1 = vpop.f32.mrb[1].mxu0 }
 0x176   : > { %v741_v3 = vmul.f32 %v1450_v62, %v536_v1 }
 0x177   : > { %v788_v4 = vadd.f32 %v1456_v2, %v742_v0 }
 0x178   : > { %v787_v5 = vadd.f32 %v1456_v2, %v741_v3 }
 0x179   : > { %828 = vst [vmem:[%s1461_s8 + $0x8] sm:$0xff] %v788_v4 }
 0x17a   : > { %827 = vst [vmem:[%s1461_s8] sm:$0xff] %v787_v5 }
 0x17c   : > { %v1074_v6 = vpop.f32.mrb[2].mxu0 }
 0x17d   : > { %v744_v7 = vmul.f32 %v1074_v6, %v1450_v62  ;;  %v546_v8 = vpop.f32.mrb[3].mxu0 }
 0x17e   : > { %v743_v9 = vmul.f32 %v1450_v62, %v546_v8 }
 0x17f   : > { %v790_v10 = vadd.f32 %v1456_v2, %v744_v7 }
 0x180   : > { %v789_v11 = vadd.f32 %v1456_v2, %v743_v9 }
 0x181   : > { %830 = vst [vmem:[%s1461_s8 + $0x18] sm:$0xff] %v790_v10 }
 0x182   : > { %829 = vst [vmem:[%s1461_s8 + $0x10] sm:$0xff] %v789_v11 }
 0x184   : > { %v1101_v12 = vpop.f32.mrb[0].mxu1  ;;  %v1077_v13 = vpop.f32.mrb[4].mxu0 }
 0x185   : > { %v762_v14 = vmul.f32 %v1101_v12, %v1450_v62  ;;  %v636_v15 = vpop.f32.mrb[1].mxu1  ;;  %v746_v16 = vmul.f32 %v1077_v13, %v1450_v62  ;;  %v556_v17 = vpop.f32.mrb[5].mxu0 }
 0x186   : > { %v761_v18 = vmul.f32 %v1450_v62, %v636_v15  ;;  %v745_v19 = vmul.f32 %v1450_v62, %v556_v17 }
 0x187   : > { %v808_v20 = vadd.f32 %v1456_v2, %v762_v14  ;;  %v792_v21 = vadd.f32 %v1456_v2, %v746_v16 }
 0x188   : > { %v807_v22 = vadd.f32 %v1456_v2, %v761_v18  ;;  %v791_v23 = vadd.f32 %v1456_v2, %v745_v19 }
 0x189   : > { %848 = vst [vmem:[%s1461_s8 + $0xa8] sm:$0xff] %v808_v20  ;;  %832 = vst [vmem:[%s1461_s8 + $0x28] sm:$0xff] %v792_v21 }
 0x18a   : > { %847 = vst [vmem:[%s1461_s8 + $0xa0] sm:$0xff] %v807_v22  ;;  %831 = vst [vmem:[%s1461_s8 + $0x20] sm:$0xff] %v791_v23 }
 0x18c   : > { %v1104_v24 = vpop.f32.mrb[2].mxu1  ;;  %v1080_v25 = vpop.f32.mrb[6].mxu0 }
 0x18d   : > { %v764_v26 = vmul.f32 %v1104_v24, %v1450_v62  ;;  %v646_v27 = vpop.f32.mrb[3].mxu1  ;;  %v748_v28 = vmul.f32 %v1080_v25, %v1450_v62  ;;  %v566_v29 = vpop.f32.mrb[7].mxu0 }
 0x18e   : > { %v763_v30 = vmul.f32 %v1450_v62, %v646_v27  ;;  %v747_v31 = vmul.f32 %v1450_v62, %v566_v29 }
 0x18f   : > { %v810_v32 = vadd.f32 %v1456_v2, %v764_v26  ;;  %v794_v33 = vadd.f32 %v1456_v2, %v748_v28 }
 0x190   : > { %v809_v34 = vadd.f32 %v1456_v2, %v763_v30  ;;  %v793_v35 = vadd.f32 %v1456_v2, %v747_v31 }
 0x191   : > { %850 = vst [vmem:[%s1461_s8 + $0xb8] sm:$0xff] %v810_v32  ;;  %834 = vst [vmem:[%s1461_s8 + $0x38] sm:$0xff] %v794_v33 }
 0x192   : > { %849 = vst [vmem:[%s1461_s8 + $0xb0] sm:$0xff] %v809_v34  ;;  %833 = vst [vmem:[%s1461_s8 + $0x30] sm:$0xff] %v793_v35 }
 0x194   : > { %v1107_v36 = vpop.f32.mrb[4].mxu1  ;;  %v1083_v37 = vpop.f32.mrb[8].mxu0 }
 0x195   : > { %v766_v38 = vmul.f32 %v1107_v36, %v1450_v62  ;;  %v656_v39 = vpop.f32.mrb[5].mxu1  ;;  %v750_v40 = vmul.f32 %v1083_v37, %v1450_v62  ;;  %v576_v41 = vpop.f32.mrb[9].mxu0 }
 0x196   : > { %v765_v42 = vmul.f32 %v1450_v62, %v656_v39  ;;  %v749_v43 = vmul.f32 %v1450_v62, %v576_v41 }
 0x197   : > { %v812_v44 = vadd.f32 %v1456_v2, %v766_v38  ;;  %v796_v45 = vadd.f32 %v1456_v2, %v750_v40 }
 0x198   : > { %v811_v46 = vadd.f32 %v1456_v2, %v765_v42  ;;  %v795_v47 = vadd.f32 %v1456_v2, %v749_v43 }
 0x199   : > { %852 = vst [vmem:[%s1461_s8 + $0xc8] sm:$0xff] %v812_v44  ;;  %836 = vst [vmem:[%s1461_s8 + $0x48] sm:$0xff] %v796_v45 }
 0x19a   : > { %851 = vst [vmem:[%s1461_s8 + $0xc0] sm:$0xff] %v811_v46  ;;  %835 = vst [vmem:[%s1461_s8 + $0x40] sm:$0xff] %v795_v47 }
 0x19c   : > { %v1110_v48 = vpop.f32.mrb[6].mxu1  ;;  %v1086_v49 = vpop.f32.mrb[10].mxu0 }
 0x19d   : > { %v768_v50 = vmul.f32 %v1110_v48, %v1450_v62  ;;  %v666_v51 = vpop.f32.mrb[7].mxu1  ;;  %v752_v52 = vmul.f32 %v1086_v49, %v1450_v62  ;;  %v586_v53 = vpop.f32.mrb[11].mxu0 }
 0x19e   : > { %v767_v54 = vmul.f32 %v1450_v62, %v666_v51  ;;  %v751_v55 = vmul.f32 %v1450_v62, %v586_v53 }
 0x19f   : > { %v814_v56 = vadd.f32 %v1456_v2, %v768_v50  ;;  %v798_v57 = vadd.f32 %v1456_v2, %v752_v52 }
 0x1a0   : > { %v813_v58 = vadd.f32 %v1456_v2, %v767_v54  ;;  %v797_v59 = vadd.f32 %v1456_v2, %v751_v55 }
 0x1a1   : > { %854 = vst [vmem:[%s1461_s8 + $0xd8] sm:$0xff] %v814_v56  ;;  %838 = vst [vmem:[%s1461_s8 + $0x58] sm:$0xff] %v798_v57 }
 0x1a2   : > { %853 = vst [vmem:[%s1461_s8 + $0xd0] sm:$0xff] %v813_v58  ;;  %837 = vst [vmem:[%s1461_s8 + $0x50] sm:$0xff] %v797_v59 }
 0x1a4   : > { %v1113_v60 = vpop.f32.mrb[8].mxu1  ;;  %v1089_v61 = vpop.f32.mrb[12].mxu0 }
 0x1a5   : > { %v770_v63 = vmul.f32 %v1113_v60, %v1450_v62  ;;  %v676_v0 = vpop.f32.mrb[9].mxu1  ;;  %v754_v1 = vmul.f32 %v1089_v61, %v1450_v62  ;;  %v596_v3 = vpop.f32.mrb[13].mxu0 }
 0x1a6   : > { %v769_v4 = vmul.f32 %v1450_v62, %v676_v0  ;;  %v753_v5 = vmul.f32 %v1450_v62, %v596_v3 }
 0x1a7   : > { %v816_v6 = vadd.f32 %v1456_v2, %v770_v63  ;;  %v800_v7 = vadd.f32 %v1456_v2, %v754_v1 }
 0x1a8   : > { %v815_v8 = vadd.f32 %v1456_v2, %v769_v4  ;;  %v799_v9 = vadd.f32 %v1456_v2, %v753_v5 }
 0x1a9   : > { %856 = vst [vmem:[%s1461_s8 + $0xe8] sm:$0xff] %v816_v6  ;;  %840 = vst [vmem:[%s1461_s8 + $0x68] sm:$0xff] %v800_v7 }
 0x1aa   : > { %855 = vst [vmem:[%s1461_s8 + $0xe0] sm:$0xff] %v815_v8  ;;  %839 = vst [vmem:[%s1461_s8 + $0x60] sm:$0xff] %v799_v9 }
 0x1ac   : > { %v1116_v10 = vpop.f32.mrb[10].mxu1  ;;  %v1092_v11 = vpop.f32.mrb[14].mxu0 }
 0x1ad   : > { %v772_v12 = vmul.f32 %v1116_v10, %v1450_v62  ;;  %v686_v13 = vpop.f32.mrb[11].mxu1  ;;  %v756_v14 = vmul.f32 %v1092_v11, %v1450_v62  ;;  %v606_v15 = vpop.f32.mrb[15].mxu0 }
 0x1ae   : > { %v771_v16 = vmul.f32 %v1450_v62, %v686_v13  ;;  %v755_v17 = vmul.f32 %v1450_v62, %v606_v15 }
 0x1af   : > { %v818_v18 = vadd.f32 %v1456_v2, %v772_v12  ;;  %v802_v19 = vadd.f32 %v1456_v2, %v756_v14 }
 0x1b0   : > { %v817_v20 = vadd.f32 %v1456_v2, %v771_v16  ;;  %v801_v21 = vadd.f32 %v1456_v2, %v755_v17  ;;  %v1095_v22 = vpop.f32.mrb[16].mxu0 }
 0x1b1   : > { %858 = vst [vmem:[%s1461_s8 + $0xf8] sm:$0xff] %v818_v18  ;;  %842 = vst [vmem:[%s1461_s8 + $0x78] sm:$0xff] %v802_v19  ;;  %v758_v23 = vmul.f32 %v1095_v22, %v1450_v62  ;;  %v616_v24 = vpop.f32.mrb[17].mxu0 }
 0x1b2   : > { %857 = vst [vmem:[%s1461_s8 + $0xf0] sm:$0xff] %v817_v20  ;;  %841 = vst [vmem:[%s1461_s8 + $0x70] sm:$0xff] %v801_v21  ;;  %v757_v25 = vmul.f32 %v1450_v62, %v616_v24 }
 0x1b3   : > { %v804_v26 = vadd.f32 %v1456_v2, %v758_v23 }
 0x1b4   : > { %v803_v27 = vadd.f32 %v1456_v2, %v757_v25  ;;  %v1098_v28 = vpop.f32.mrb[18].mxu0  ;;  %v1119_v29 = vpop.f32.mrb[12].mxu1 }
 0x1b5   : > { %844 = vst [vmem:[%s1461_s8 + $0x88] sm:$0xff] %v804_v26  ;;  %v760_v30 = vmul.f32 %v1098_v28, %v1450_v62  ;;  %v774_v31 = vmul.f32 %v1119_v29, %v1450_v62  ;;  %v626_v32 = vpop.f32.mrb[19].mxu0  ;;  %v696_v33 = vpop.f32.mrb[13].mxu1 }
 0x1b6   : > { %843 = vst [vmem:[%s1461_s8 + $0x80] sm:$0xff] %v803_v27  ;;  %v759_v34 = vmul.f32 %v1450_v62, %v626_v32  ;;  %v773_v35 = vmul.f32 %v1450_v62, %v696_v33 }
 0x1b7   : > { %v806_v36 = vadd.f32 %v1456_v2, %v760_v30  ;;  %v820_v37 = vadd.f32 %v1456_v2, %v774_v31 }
 0x1b8   : > { %v805_v38 = vadd.f32 %v1456_v2, %v759_v34  ;;  %v819_v39 = vadd.f32 %v1456_v2, %v773_v35 }
 0x1b9   : > { %846 = vst [vmem:[%s1461_s8 + $0x98] sm:$0xff] %v806_v36  ;;  %860 = vst [vmem:[%s1461_s8 + $0x108] sm:$0xff] %v820_v37 }
 0x1ba   : > { %845 = vst [vmem:[%s1461_s8 + $0x90] sm:$0xff] %v805_v38  ;;  %859 = vst [vmem:[%s1461_s8 + $0x100] sm:$0xff] %v819_v39 }
 0x1bc   : > { %v1122_v40 = vpop.f32.mrb[14].mxu1 }
 0x1bd   : > { %v776_v41 = vmul.f32 %v1122_v40, %v1450_v62  ;;  %v706_v42 = vpop.f32.mrb[15].mxu1 }
 0x1be   : > { %v775_v43 = vmul.f32 %v1450_v62, %v706_v42 }
 0x1bf   : > { %v822_v44 = vadd.f32 %v1456_v2, %v776_v41 }
 0x1c0   : > { %v821_v45 = vadd.f32 %v1456_v2, %v775_v43 }
 0x1c1   : > { %862 = vst [vmem:[%s1461_s8 + $0x118] sm:$0xff] %v822_v44 }
 0x1c2   : > { %861 = vst [vmem:[%s1461_s8 + $0x110] sm:$0xff] %v821_v45 }
 0x1c4   : > { %v1125_v46 = vpop.f32.mrb[16].mxu1 }
 0x1c5   : > { %v778_v47 = vmul.f32 %v1125_v46, %v1450_v62  ;;  %v716_v48 = vpop.f32.mrb[17].mxu1 }
 0x1c6   : > { %v777_v49 = vmul.f32 %v1450_v62, %v716_v48 }
 0x1c7   : > { %v824_v50 = vadd.f32 %v1456_v2, %v778_v47 }
 0x1c8   : > { %v823_v51 = vadd.f32 %v1456_v2, %v777_v49 }
 0x1c9   : > { %864 = vst [vmem:[%s1461_s8 + $0x128] sm:$0xff] %v824_v50 }
 0x1ca   : > { %863 = vst [vmem:[%s1461_s8 + $0x120] sm:$0xff] %v823_v51 }
 0x1cc   : > { %v1128_v52 = vpop.f32.mrb[18].mxu1 }
 0x1cd   : > { %v780_v53 = vmul.f32 %v1128_v52, %v1450_v62  ;;  %v726_v54 = vpop.f32.mrb[19].mxu1 }
 0x1ce   : > { %v779_v55 = vmul.f32 %v1450_v62, %v726_v54 }
 0x1cf   : > { %v826_v56 = vadd.f32 %v1456_v2, %v780_v53 }
 0x1d0   : > { %v825_v57 = vadd.f32 %v1456_v2, %v779_v55 }
 0x1d1   : > { %866 = vst [vmem:[%s1461_s8 + $0x138] sm:$0xff] %v826_v56 }
 0x1d2   : > { %865 = vst [vmem:[%s1461_s8 + $0x130] sm:$0xff] %v825_v57 }
 0x1d3   : > { %1217 = shalt.err (!%p1214_p5)
}
 0x1d4   : > { %s1218_s26 = scalar_lea.hbm %s1581_s13, 5120  ;;  %s1222_s5 = scalar_lea.hbm %s1640_s4, 10240 }
 0x1d5   : > { %p1219_p6 = scmp.ne.s32.totalorder %s1581_s13, %s1218_s26  ;;  %p1223_p10 = scmp.lt.u32.totalorder %s1581_s13, %s1640_s4 }
 0x1d6   : > { %p1224_p11 = scmp.lt.u32.totalorder %s1222_s5, %s1218_s26  ;;  %p1226_p13 = scmp.lt.u32.totalorder %s1218_s26, %s1581_s13 }
 0x1d7   : > { %p1220_p7 = pnand %p1219_p6, %p1352_p4 }
 0x1d8   : > { %p1225_p12 = por %p1224_p11, %p1223_p10 }
 0x1d9   : > { %p1221_p9 = pneg %p1220_p7 }
 0x1da   : > { %p1227_p0 = por %p1226_p13, %p1225_p12 }
 0x1dc   : > { %p1228_p1 = pnand %p1227_p0, %p1221_p9 }
 0x1de   : > { %1231 = shalt.err (!%p1228_p1)
}
 0x1df   : > { %s1285_s8 = smov 128   ;;  %s1286_s9 = smov 8  }
 0x1e0   : > { %1146 = dma.vmem_to_hbm [thread:$0]  (%p1352_p4), %s1583_s10, 5120, %s1581_s13, %s1590_s18, %s1285_s8, %s1285_s8, %s1286_s9  }
 0x1e1 PF: > { %p1152_p2 = scmp.ge.s32.totalorder %s1282_s20, 2  ;;  %s898_s11 = sand.u32 1, %s1262_s15  }
 0x1e2   : > { %s899_s12 = scalar_lea.sflag [#allocation3], %s898_s11 }
 0x1e3   : > { %p1149_p3 = pnand %p1152_p2, %p1359_p8 }
 0x1e5   : > { %1257 = dma.done.wait (!%p1149_p3), %s899_s12, 5120  }
 0x1e6   : > { %1259 = vsyncadd (!%p1149_p3), %s899_s12, 4294962176  ;;  %s17_s20 = sadd.s32 1, %s1282_s20   ;;  %s1643_s15 = smov %s1266_s16 }
 0x1e7   : > { %p14_p5 = scmp.ge.s32.totalorder %s17_s20, 4   ;;  %s1644_s16 = smov %s1270_s17 }
 0x1e8   : > { %s1645_s17 = smov %s1365_s28  ;;  %s1646_s18 = smov %s1278_s19 }
 0x1e9   : > { %s1647_s19 = smov %s1649_s23  ;;  %16 = sbr.rel (!%p14_p5) target bundleno = 4 (0x4), region = 71 }
 0x1f0   :  { %904 = vsyncpa [#allocation3], 1 }
 0x1f1   :  { %906 = vsyncpa [#allocation3 + $0x1], 1 }

</bundles_post_ra>
